<compile_context>
chip_gen: v7x
topology: tpu7x:2x2x1
jax: 0.10.0
libtpu: 0.0.40
codegen_flags: <defaults>
</compile_context>

<pallas_src>
import functools

import jax
import jax.numpy as jnp
from jax.experimental import pallas as pl
from jax.experimental.pallas import tpu as pltpu

LANE = 128  # TPU vreg lane width


def _round_up(x, m):
    return ((x + m - 1) // m) * m


def _mlp_kernel(x_ref, w1_ref, b1_ref, w2_ref, b2_ref, w3_ref, b3_ref, o_ref):
    # MXU operands in bf16; bias add / tanh / accumulation in f32.
    x = x_ref[...].astype(jnp.bfloat16)
    h1 = jnp.tanh(
        jnp.dot(x, w1_ref[...], preferred_element_type=jnp.float32) + b1_ref[...]
    )
    h2 = jnp.tanh(
        jnp.dot(h1.astype(jnp.bfloat16), w2_ref[...],
                preferred_element_type=jnp.float32) + b2_ref[...]
    )
    out = jnp.dot(h2.astype(jnp.bfloat16), w3_ref[...],
                  preferred_element_type=jnp.float32) + b3_ref[...]
    # Output block is (bm, n_out): only the logical columns are stored.
    o_ref[...] = out.astype(o_ref.dtype)


def pad_params(w1, b1, w2, b2, w3, b3):
    """One-time parameter prep.

    * Hidden dims are zero-padded to 128 lanes (exact: tanh(0)=0).
    * Weights are cast to bf16 (MXU operands); biases stay f32 (VPU add).
    * The input and output feature dims are NOT padded: padding them would
      only inflate the streamed x / out HBM traffic.
    Weights are (in, out); biases are (1, out)."""

    def pad2(a, rows, cols):
        return jnp.pad(a, ((0, rows - a.shape[0]), (0, cols - a.shape[1])))

    n_in, h1 = w1.shape
    h2 = w2.shape[1]
    n_out = w3.shape[1]
    h1p, h2p = _round_up(h1, LANE), _round_up(h2, LANE)
    return (
        pad2(w1, n_in, h1p).astype(jnp.bfloat16), pad2(b1, 1, h1p),
        pad2(w2, h1p, h2p).astype(jnp.bfloat16), pad2(b2, 1, h2p),
        pad2(w3, h2p, n_out).astype(jnp.bfloat16), b3,
    )


@functools.partial(jax.jit, static_argnames=("block_m",))
def network_forward(x, w1, b1, w2, b2, w3, b3, *, block_m=2048):
    """Pallas forward pass of NetWork.

    x: (B, n_input) float32.  w/b: prepped params from pad_params().
    block_m: batch tile (multiple of 8; 2048-8192 recommended for large B)."""
    B, n_in = x.shape
    h1p = w1.shape[1]
    h2p = w2.shape[1]
    n_out = w3.shape[1]

    # One tile when the batch fits; large batches split naturally into
    # multiple "parallel" steps (shardable across v7x's two TensorCores).
    bm = min(block_m, _round_up(B, 8))
    grid = (pl.cdiv(B, bm),)

    cost = pl.CostEstimate(
        flops=2 * B * (n_in * h1p + h1p * h2p + h2p * n_out),
        transcendentals=B * (h1p + h2p),
        bytes_accessed=(
            4 * B * (n_in + n_out)                       # streamed x / out (f32)
            + 2 * (n_in * h1p + h1p * h2p + h2p * n_out)  # bf16 weights
            + 4 * (h1p + h2p + n_out)                     # f32 biases
        ),
    )

    return pl.pallas_call(
        _mlp_kernel,
        out_shape=jax.ShapeDtypeStruct((B, n_out), x.dtype),
        grid_spec=pltpu.PrefetchScalarGridSpec(
            num_scalar_prefetch=0,
            grid=grid,
            in_specs=[
                # streamed batch tile of the input
                pl.BlockSpec((bm, n_in), lambda i: (i, 0)),
                # weights / biases: constant block index -> VMEM-resident
                pl.BlockSpec((n_in, h1p), lambda i: (0, 0)),
                pl.BlockSpec((1, h1p), lambda i: (0, 0)),
                pl.BlockSpec((h1p, h2p), lambda i: (0, 0)),
                pl.BlockSpec((1, h2p), lambda i: (0, 0)),
                pl.BlockSpec((h2p, n_out), lambda i: (0, 0)),
                pl.BlockSpec((1, n_out), lambda i: (0, 0)),
            ],
            # logical-width output -> no post-kernel slice, minimal HBM writes
            out_specs=pl.BlockSpec((bm, n_out), lambda i: (i, 0)),
        ),
        compiler_params=pltpu.CompilerParams(
            dimension_semantics=("parallel",),
        ),
        cost_estimate=cost,
    )(x, w1, b1, w2, b2, w3, b3)


def init_params(key, n_input, n_hidden_1, n_hidden_2, n_output):
    """Deterministic synthetic parameters (PyTorch-Linear-like uniform init),
    stored as (in, out) weight matrices plus (1, out) biases."""
    ks = jax.random.split(key, 6)

    def lin(kw, kb, fan_in, fan_out):
        bound = 1.0 / jnp.sqrt(jnp.float32(fan_in))
        w = jax.random.uniform(kw, (fan_in, fan_out), jnp.float32, -bound, bound)
        b = jax.random.uniform(kb, (1, fan_out), jnp.float32, -bound, bound)
        return w, b

    w1, b1 = lin(ks[0], ks[1], n_input, n_hidden_1)
    w2, b2 = lin(ks[2], ks[3], n_hidden_1, n_hidden_2)
    w3, b3 = lin(ks[4], ks[5], n_hidden_2, n_output)
    return w1, b1, w2, b2, w3, b3


def reference_forward_f32(x, w1, b1, w2, b2, w3, b3):
    h1 = jnp.tanh(x @ w1 + b1)
    h2 = jnp.tanh(h1 @ w2 + b2)
    return h2 @ w3 + b3


def reference_forward_mixed(x, w1, b1, w2, b2, w3, b3):
    """Same mixed precision as the kernel: bf16 MXU operands, f32 everything else."""
    bf = jnp.bfloat16
    h1 = jnp.tanh(jnp.dot(x.astype(bf), w1.astype(bf),
                          preferred_element_type=jnp.float32) + b1)
    h2 = jnp.tanh(jnp.dot(h1.astype(bf), w2.astype(bf),
                          preferred_element_type=jnp.float32) + b2)
    return jnp.dot(h2.astype(bf), w3.astype(bf),
                   preferred_element_type=jnp.float32) + b3


if __name__ == "__main__":
    # Shapes consistent with the CRBI trainer MLP (small test sizes).
    B, n_input, n_hidden_1, n_hidden_2, n_output = 32, 6, 64, 64, 6

    key = jax.random.PRNGKey(0)
    kx, kp = jax.random.split(key)
    x = jax.random.normal(kx, (B, n_input), jnp.float32)
    params = init_params(kp, n_input, n_hidden_1, n_hidden_2, n_output)

    # one-time parameter prep (lane padding + bf16 weight cast)
    padded = jax.block_until_ready(pad_params(*params))

    out = jax.block_until_ready(network_forward(x, *padded))
    assert out.shape == (B, n_output)

    # Tight check vs a pure-JAX reference with identical mixed precision.
    ref_mixed = reference_forward_mixed(x, *params)
    assert jnp.allclose(out, ref_mixed, atol=2e-3, rtol=2e-3), \
        "mismatch vs mixed-precision reference"
    # Semantic check vs the full-f32 PyTorch-equivalent forward (bf16 operand
    # rounding only).
    ref_f32 = reference_forward_f32(x, *params)
    assert jnp.allclose(out, ref_f32, atol=5e-2, rtol=5e-2), \
        "mismatch vs f32 reference"

    print("KERNEL_OK")
</pallas_src>

<mosaic_0001>
module attributes {stable_mosaic.version = 11 : i64} {
  func.func @_mlp_kernel(%arg0: i32, %arg1: memref<32x6xf32, #tpu.memory_space<vmem>>, %arg2: memref<6x128xbf16, #tpu.memory_space<vmem>>, %arg3: memref<1x128xf32, #tpu.memory_space<vmem>>, %arg4: memref<128x128xbf16, #tpu.memory_space<vmem>>, %arg5: memref<1x128xf32, #tpu.memory_space<vmem>>, %arg6: memref<128x6xbf16, #tpu.memory_space<vmem>>, %arg7: memref<1x6xf32, #tpu.memory_space<vmem>>, %arg8: memref<32x6xf32, #tpu.memory_space<vmem>>) attributes {dimension_semantics = [#tpu.dimension_semantics<parallel>], iteration_bounds = array<i64: 1>, scalar_prefetch = 0 : i64, scratch_operands = 0 : i64, tpu.core_type = #tpu.core_type<tc>, window_params = [{transform_indices = @transform_0, window_bounds = array<i64: 32, 6>}, {pipeline_mode = #tpu.pipeline_mode<synchronous>, transform_indices = @transform_1, window_bounds = array<i64: 6, 128>}, {pipeline_mode = #tpu.pipeline_mode<synchronous>, transform_indices = @transform_2, window_bounds = array<i64: 1, 128>}, {pipeline_mode = #tpu.pipeline_mode<synchronous>, transform_indices = @transform_3, window_bounds = array<i64: 128, 128>}, {pipeline_mode = #tpu.pipeline_mode<synchronous>, transform_indices = @transform_4, window_bounds = array<i64: 1, 128>}, {pipeline_mode = #tpu.pipeline_mode<synchronous>, transform_indices = @transform_5, window_bounds = array<i64: 128, 6>}, {pipeline_mode = #tpu.pipeline_mode<synchronous>, transform_indices = @transform_6, window_bounds = array<i64: 1, 6>}, {transform_indices = @transform_7, window_bounds = array<i64: 32, 6>}]} {
    %c0 = arith.constant 0 : index
    %c0_0 = arith.constant 0 : index
    %0 = vector.load %arg1[%c0, %c0_0] : memref<32x6xf32, #tpu.memory_space<vmem>>, vector<32x6xf32>
    %1 = arith.truncf %0 : vector<32x6xf32> to vector<32x6xbf16>
    %c0_1 = arith.constant 0 : index
    %c0_2 = arith.constant 0 : index
    %2 = vector.load %arg2[%c0_1, %c0_2] : memref<6x128xbf16, #tpu.memory_space<vmem>>, vector<6x128xbf16>
    %cst = arith.constant dense<0.000000e+00> : vector<32x128xf32>
    %3 = tpu.matmul %1, %2, %cst {dimension_numbers = #tpu.dot_dimension_numbers<[1], [0], [0], [1], [0, 0, 1, 1], [], []>} : vector<32x6xbf16>, vector<6x128xbf16>, vector<32x128xf32> -> vector<32x128xf32>
    %c0_3 = arith.constant 0 : index
    %c0_4 = arith.constant 0 : index
    %4 = vector.load %arg3[%c0_3, %c0_4] : memref<1x128xf32, #tpu.memory_space<vmem>>, vector<1x128xf32>
    %5 = vector.broadcast %4 : vector<1x128xf32> to vector<32x128xf32>
    %6 = arith.addf %3, %5 : vector<32x128xf32>
    %7 = math.tanh %6 : vector<32x128xf32>
    %8 = arith.truncf %7 : vector<32x128xf32> to vector<32x128xbf16>
    %c0_5 = arith.constant 0 : index
    %c0_6 = arith.constant 0 : index
    %9 = vector.load %arg4[%c0_5, %c0_6] : memref<128x128xbf16, #tpu.memory_space<vmem>>, vector<128x128xbf16>
    %cst_7 = arith.constant dense<0.000000e+00> : vector<32x128xf32>
    %10 = tpu.matmul %8, %9, %cst_7 {dimension_numbers = #tpu.dot_dimension_numbers<[1], [0], [0], [1], [0, 0, 1, 1], [], []>} : vector<32x128xbf16>, vector<128x128xbf16>, vector<32x128xf32> -> vector<32x128xf32>
    %c0_8 = arith.constant 0 : index
    %c0_9 = arith.constant 0 : index
    %11 = vector.load %arg5[%c0_8, %c0_9] : memref<1x128xf32, #tpu.memory_space<vmem>>, vector<1x128xf32>
    %12 = vector.broadcast %11 : vector<1x128xf32> to vector<32x128xf32>
    %13 = arith.addf %10, %12 : vector<32x128xf32>
    %14 = math.tanh %13 : vector<32x128xf32>
    %15 = arith.truncf %14 : vector<32x128xf32> to vector<32x128xbf16>
    %c0_10 = arith.constant 0 : index
    %c0_11 = arith.constant 0 : index
    %16 = vector.load %arg6[%c0_10, %c0_11] : memref<128x6xbf16, #tpu.memory_space<vmem>>, vector<128x6xbf16>
    %cst_12 = arith.constant dense<0.000000e+00> : vector<32x6xf32>
    %17 = tpu.matmul %15, %16, %cst_12 {dimension_numbers = #tpu.dot_dimension_numbers<[1], [0], [0], [1], [0, 0, 1, 1], [], []>} : vector<32x128xbf16>, vector<128x6xbf16>, vector<32x6xf32> -> vector<32x6xf32>
    %c0_13 = arith.constant 0 : index
    %c0_14 = arith.constant 0 : index
    %18 = vector.load %arg7[%c0_13, %c0_14] : memref<1x6xf32, #tpu.memory_space<vmem>>, vector<1x6xf32>
    %19 = vector.broadcast %18 : vector<1x6xf32> to vector<32x6xf32>
    %20 = arith.addf %17, %19 : vector<32x6xf32>
    %c0_15 = arith.constant 0 : index
    %c0_16 = arith.constant 0 : index
    %21 = vector.load %arg8[%c0_15, %c0_16] : memref<32x6xf32, #tpu.memory_space<vmem>>, vector<32x6xf32>
    tpu.vector_store %arg8[%c0_15, %c0_16], %20 {strides = array<i32>} : memref<32x6xf32, #tpu.memory_space<vmem>>, vector<32x6xf32>,
    return
  }
  func.func @transform_0(%arg0: i32) -> (i32, i32) {
    %c0_i32 = arith.constant 0 : i32
    %c0_i32_0 = arith.constant 0 : i32
    return %arg0, %c0_i32 : i32, i32
  }
  func.func @transform_1(%arg0: i32) -> (i32, i32) {
    %c0_i32 = arith.constant 0 : i32
    %c0_i32_0 = arith.constant 0 : i32
    %c0_i32_1 = arith.constant 0 : i32
    return %c0_i32, %c0_i32_0 : i32, i32
  }
  func.func @transform_2(%arg0: i32) -> (i32, i32) {
    %c0_i32 = arith.constant 0 : i32
    %c0_i32_0 = arith.constant 0 : i32
    %c0_i32_1 = arith.constant 0 : i32
    return %c0_i32, %c0_i32_0 : i32, i32
  }
  func.func @transform_3(%arg0: i32) -> (i32, i32) {
    %c0_i32 = arith.constant 0 : i32
    %c0_i32_0 = arith.constant 0 : i32
    %c0_i32_1 = arith.constant 0 : i32
    return %c0_i32, %c0_i32_0 : i32, i32
  }
  func.func @transform_4(%arg0: i32) -> (i32, i32) {
    %c0_i32 = arith.constant 0 : i32
    %c0_i32_0 = arith.constant 0 : i32
    %c0_i32_1 = arith.constant 0 : i32
    return %c0_i32, %c0_i32_0 : i32, i32
  }
  func.func @transform_5(%arg0: i32) -> (i32, i32) {
    %c0_i32 = arith.constant 0 : i32
    %c0_i32_0 = arith.constant 0 : i32
    %c0_i32_1 = arith.constant 0 : i32
    return %c0_i32, %c0_i32_0 : i32, i32
  }
  func.func @transform_6(%arg0: i32) -> (i32, i32) {
    %c0_i32 = arith.constant 0 : i32
    %c0_i32_0 = arith.constant 0 : i32
    %c0_i32_1 = arith.constant 0 : i32
    return %c0_i32, %c0_i32_0 : i32, i32
  }
  func.func @transform_7(%arg0: i32) -> (i32, i32) {
    %c0_i32 = arith.constant 0 : i32
    %c0_i32_0 = arith.constant 0 : i32
    return %arg0, %c0_i32 : i32, i32
  }
}

</mosaic_0001>

<bundles_post_ra>
// kernel: network_forward.1
= control target key start
LH: loop header
LB: loop body
LE: loop exit
PB: predicated region body
PF: predicated region fallthrough
CT: control target
= control target key end

     0   :  { %vm48_vm0 = vcmask 1042432   ;;  %vm41_vm1 = vcmask 48128   ;;  %s614_s1 = inlined_call_operand.vmem [shape: bf16[6,128], index: 1, kind: input, shape index: {}]   ;;  %s615_s0 = inlined_call_operand.vmem [shape: f32[32,6], index: 0, kind: input, shape index: {}]   ;;  %s616_s3 = inlined_call_operand.vmem [shape: bf16[128,128], index: 3, kind: input, shape index: {}]   ;;  %s617_s5 = inlined_call_operand.vmem [shape: bf16[128,6], index: 5, kind: input, shape index: {}]   ;;  %s618_s2 = inlined_call_operand.vmem [shape: f32[1,128], index: 2, kind: input, shape index: {}]   ;;  %s619_s4 = inlined_call_operand.vmem [shape: f32[1,128], index: 4, kind: input, shape index: {}]   ;;  %s620_s6 = inlined_call_operand.vmem [shape: f32[1,6], index: 6, kind: input, shape index: {}]   ;;  %s621_s7 = inlined_call_operand.vmem [shape: f32[32,6], index: 7, kind: output, shape index: {}]  }
   0x1   :  { %v33_v0 = vld [vmem:[%s614_s1] sm:$0x7]  ;;  %v28_v2 = vld [vmem:[%s615_s0 + $0x8] sm:$0xff]  ;;  %v29_v5 = vld [vmem:[%s615_s0 + $0x10] sm:$0xff] }
   0x2   :  { %v27_v1 = vld [vmem:[%s615_s0] sm:$0xff]  ;;  %451 = vmatprep.subr.msk.bf16.mxu0 %vm48_vm0, %v33_v0  ;;  %v50_v3 = vsel %vm48_vm0, %v33_v0, 0  ;;  %v30_v6 = vld [vmem:[%s615_s0 + $0x18] sm:$0xff]  ;;  %v453_v9 = vld [vmem:[%s616_s3 + $0x8] sm:$0xff]  }
   0x3   :  { %v31_v4 = vpack.c.bf16 %v28_v2, %v27_v1  ;;  %406 = vmatpush3.bf16.msra.mxu0 %v50_v3  ;;  %v32_v7 = vpack.c.bf16 %v30_v6, %v29_v5  ;;  %v452_v8 = vld [vmem:[%s616_s3] sm:$0xff]   ;;  %v454_v10 = vld [vmem:[%s616_s3 + $0x10] sm:$0xff]   ;;  %v455_v11 = vld [vmem:[%s616_s3 + $0x18] sm:$0xff]  }
   0x4   :  { %411 = vmatprep.subr.bf16.mxu1 %v452_v8  ;;  %v456_v12 = vld [vmem:[%s616_s3 + $0x20] sm:$0xff]   ;;  %v457_v13 = vld [vmem:[%s616_s3 + $0x28] sm:$0xff]   ;;  %v458_v14 = vld [vmem:[%s616_s3 + $0x30] sm:$0xff]  }
   0x5   :  { %407 = vmatprep.mubr.msk.bf16.mxu0 %vm41_vm1, %v31_v4  ;;  %412 = vmatpush3.bf16.msra.mxu1 %v452_v8  ;;  %v459_v15 = vld [vmem:[%s616_s3 + $0x38] sm:$0xff]   ;;  %v460_v16 = vld [vmem:[%s617_s5] sm:$0xff]   ;;  %v461_v17 = vld [vmem:[%s617_s5 + $0x8] sm:$0xff]  }
   0x6   :  { %408 = vmatmul.mubr.msk.bf16.vlgmr.msra.gmra.mrb[0].mxu0 %vm41_vm1, %v32_v7  ;;  %413 = vmatprep.subr.bf16.mxu1 %v453_v9  ;;  %v462_v18 = vld [vmem:[%s617_s5 + $0x10] sm:$0xff]   ;;  %v361_v19 = vld [vmem:[%s618_s2] ss:$0 sm:$0xff]  ;;  %v463_v34 = vld [vmem:[%s617_s5 + $0x18] sm:$0xff]  }
   0x7   :  { %431 = vmatprep.subr.bf16.mxu0 %v460_v16  ;;  %v464_v35 = vld [vmem:[%s617_s5 + $0x20] sm:$0xff]   ;;  %v465_v36 = vld [vmem:[%s617_s5 + $0x28] sm:$0xff]   ;;  %v466_v37 = vld [vmem:[%s617_s5 + $0x30] sm:$0xff]  }
   0x8   :  { %432 = vmatpush3.bf16.msra.mxu0 %v460_v16  ;;  %v467_v38 = vld [vmem:[%s617_s5 + $0x38] sm:$0xff]   ;;  %v364_v39 = vld [vmem:[%s619_s4] ss:$0 sm:$0xff] }
   0x9   :  { %414 = vmatpush3.bf16.msra.mxu1 %v453_v9  ;;  %433 = vmatprep.subr.bf16.mxu0 %v461_v17  ;;  %v373_v54 = vld [vmem:[%s620_s6] ss:$0 sm:$0xff] }
   0xa   :  { %415 = vmatprep.subr.bf16.mxu1 %v454_v10 }
   0xc   :  { %434 = vmatpush3.bf16.msra.mxu0 %v461_v17 }
   0xd   :  { %416 = vmatpush3.bf16.msra.mxu1 %v454_v10  ;;  %435 = vmatprep.subr.bf16.mxu0 %v462_v18 }
   0xe   :  { %417 = vmatprep.subr.bf16.mxu1 %v455_v11 }
  0x10   :  { %436 = vmatpush3.bf16.msra.mxu0 %v462_v18 }
  0x11   :  { %418 = vmatpush3.bf16.msra.mxu1 %v455_v11  ;;  %437 = vmatprep.subr.bf16.mxu0 %v463_v34 }
  0x12   :  { %419 = vmatprep.subr.bf16.mxu1 %v456_v12 }
  0x14   :  { %438 = vmatpush3.bf16.msra.mxu0 %v463_v34 }
  0x15   :  { %420 = vmatpush3.bf16.msra.mxu1 %v456_v12  ;;  %439 = vmatprep.subr.bf16.mxu0 %v464_v35 }
  0x16   :  { %421 = vmatprep.subr.bf16.mxu1 %v457_v13 }
  0x18   :  { %440 = vmatpush3.bf16.msra.mxu0 %v464_v35 }
  0x19   :  { %422 = vmatpush3.bf16.msra.mxu1 %v457_v13  ;;  %441 = vmatprep.subr.bf16.mxu0 %v465_v36 }
  0x1a   :  { %423 = vmatprep.subr.bf16.mxu1 %v458_v14 }
  0x1c   :  { %442 = vmatpush3.bf16.msra.mxu0 %v465_v36 }
  0x1d   :  { %424 = vmatpush3.bf16.msra.mxu1 %v458_v14  ;;  %443 = vmatprep.subr.bf16.mxu0 %v466_v37 }
  0x1e   :  { %425 = vmatprep.subr.bf16.mxu1 %v459_v15 }
  0x20   :  { %444 = vmatpush3.bf16.msra.mxu0 %v466_v37 }
  0x21   :  { %426 = vmatpush3.bf16.msra.mxu1 %v459_v15  ;;  %445 = vmatprep.subr.bf16.mxu0 %v467_v38 }
  0x24   :  { %446 = vmatpush3.bf16.msra.mxu0 %v467_v38 }
  0xd9   :  { %v409_v20 = vpop.f32.mrb[0].mxu0 }
  0xda   :  { %v95_v21 = vadd.f32 %v409_v20, %v361_v19  ;;  %v86_v22 = vpop.f32.mrb[1].mxu0 }
  0xdb   :  { %v87_v23 = vadd.f32 %v361_v19, %v86_v22  ;;  %v410_v24 = vpop.f32.mrb[2].mxu0 }
  0xdc   :  { %468 = vtanh.f32 %v95_v21  ;;  %v98_v25 = vadd.f32 %v410_v24, %v361_v19  ;;  %v89_v26 = vpop.f32.mrb[3].mxu0 }
  0xdd   :  { %470 = vtanh.f32 %v87_v23  ;;  %v90_v27 = vadd.f32 %v361_v19, %v89_v26 }
  0xde   :  { %472 = vtanh.f32 %v98_v25 }
  0xdf   :  { %474 = vtanh.f32 %v90_v27 }
  0xe6   :  { %v469_v28 = vpop.eup %468 }
  0xe7   :  { %v471_v29 = vpop.eup %470 }
  0xe8   :  { %v473_v30 = vpop.eup %472 }
  0xe9   :  { %v475_v31 = vpop.eup %474  ;;  %v106_v32 = vpack.c.bf16 %v473_v30, %v469_v28 }
  0xea   :  { %v105_v33 = vpack.c.bf16 %v475_v31, %v471_v29 }
  0xec   :  { %427 = vmatprep.mubr.bf16.mxu1 %v105_v33 }
  0xed   :  { %428 = vmatmul.mubr.bf16.vlgmr.msra.gmra.mrb[0].mxu1 %v106_v32 }
 0x1c0   :  { %v429_v40 = vpop.f32.mrb[0].mxu1 }
 0x1c1   :  { %v221_v41 = vadd.f32 %v429_v40, %v364_v39  ;;  %v212_v42 = vpop.f32.mrb[1].mxu1 }
 0x1c2   :  { %v213_v43 = vadd.f32 %v364_v39, %v212_v42  ;;  %v430_v44 = vpop.f32.mrb[2].mxu1 }
 0x1c3   :  { %476 = vtanh.f32 %v221_v41  ;;  %v224_v45 = vadd.f32 %v430_v44, %v364_v39  ;;  %v215_v46 = vpop.f32.mrb[3].mxu1 }
 0x1c4   :  { %478 = vtanh.f32 %v213_v43  ;;  %v216_v47 = vadd.f32 %v364_v39, %v215_v46 }
 0x1c5   :  { %480 = vtanh.f32 %v224_v45 }
 0x1c6   :  { %482 = vtanh.f32 %v216_v47 }
 0x1cd   :  { %v477_v48 = vpop.eup %476 }
 0x1ce   :  { %v479_v49 = vpop.eup %478 }
 0x1cf   :  { %v481_v50 = vpop.eup %480 }
 0x1d0   :  { %v483_v51 = vpop.eup %482  ;;  %v232_v52 = vpack.c.bf16 %v481_v50, %v477_v48 }
 0x1d1   :  { %v231_v53 = vpack.c.bf16 %v483_v51, %v479_v49 }
 0x1d3   :  { %447 = vmatprep.mubr.bf16.mxu0 %v231_v53 }
 0x1d4   :  { %448 = vmatmul.mubr.bf16.vlgmr.msra.gmra.mrb[4].mxu0 %v232_v52 }
 0x2a7   :  { %v449_v55 = vpop.f32.mrb[4].mxu0 }
 0x2a8   :  { %v347_v56 = vadd.f32 %v449_v55, %v373_v54  ;;  %v338_v57 = vpop.f32.mrb[5].mxu0 }
 0x2a9   :  { %v339_v58 = vadd.f32 %v373_v54, %v338_v57  ;;  %v450_v59 = vpop.f32.mrb[6].mxu0 }
 0x2aa   :  { %355 = vst.msk [vmem:[%s621_s7 + $0x10] sm:$0xff] %vm41_vm1, %v347_v56  ;;  %v350_v60 = vadd.f32 %v450_v59, %v373_v54  ;;  %v341_v61 = vpop.f32.mrb[7].mxu0 }
 0x2ab   :  { %353 = vst.msk [vmem:[%s621_s7] sm:$0xff] %vm41_vm1, %v339_v58  ;;  %v342_v62 = vadd.f32 %v373_v54, %v341_v61 }
 0x2ac   :  { %356 = vst.msk [vmem:[%s621_s7 + $0x18] sm:$0xff] %vm41_vm1, %v350_v60 }
 0x2ad   :  { %354 = vst.msk [vmem:[%s621_s7 + $0x8] sm:$0xff] %vm41_vm1, %v342_v62 }

</bundles_post_ra>
